<compile_context>
chip_gen: v7x
topology: tpu7x:2x2x1
jax: 0.10.0
libtpu: 0.0.40
codegen_flags: <defaults>
</compile_context>

<pallas_src>
import functools

import jax
import jax.numpy as jnp
from jax import lax
from jax.experimental import pallas as pl
from jax.experimental.pallas import tpu as pltpu

_SUBLANE = 8  # f32 sublane granule


def _round_up(a: int, b: int) -> int:
    return (a + b - 1) // b * b


def _vmem_capacity_bytes() -> int:
    try:
        return int(pltpu.get_tpu_info().vmem_capacity_bytes)
    except Exception:
        return 64 << 20  # conservative fallback: v7x per-TensorCore VMEM


def _embed_gather_kernel(idx_smem, w_ref, o_ref, *, unroll):
    """Gather table rows for one token tile (exact, no MXU, no one-hot).

    idx_smem: (n_pad,) int32 token ids in SMEM (scalar prefetch)
    w_ref:    (num_embeddings, embed_dim) full table, VMEM resident
    o_ref:    (tile_n, embed_dim) dense output slab for this token tile
    """
    tile_n = o_ref.shape[0]
    num_emb = w_ref.shape[0]
    base = pl.program_id(0) * tile_n

    def body(t, carry):
        tok = idx_smem[base + t]
        # The module's `add = x + x`, on the scalar unit.  Clamp so a doubled
        # id never reads past the table (PyTorch would raise; the test harness
        # only feeds ids whose doubled value is in range).
        row = jnp.clip(tok + tok, 0, num_emb - 1)
        o_ref[pl.ds(t, 1), :] = w_ref[pl.ds(row, 1), :]
        return carry

    lax.fori_loop(0, tile_n, body, 0, unroll=unroll)


def embedding_from_add(x, weight):
    """Computes torch.nn.Embedding(_weight=weight)(x + x) with one Pallas kernel."""
    num_emb, embed_dim = weight.shape
    orig_shape = x.shape
    flat_idx = x.reshape(-1).astype(jnp.int32)
    n = flat_idx.shape[0]
    itemsize = 4  # f32 table / output

    # --- tile sizing from per-core VMEM ------------------------------------
    vmem = _vmem_capacity_bytes()
    table_bytes = num_emb * embed_dim * itemsize
    # The table's index_map is constant but the pipeline still double-buffers
    # it (pl.Buffered(1) on that spec would reclaim half); budget ~half of
    # VMEM for table buffers plus double-buffered output tiles.
    out_budget = max(vmem // 2 - 2 * table_bytes,
                     2 * _SUBLANE * embed_dim * itemsize)
    tile_n = out_budget // (2 * embed_dim * itemsize)
    tile_n = max(_SUBLANE, min(1024, (tile_n // _SUBLANE) * _SUBLANE))

    n8 = _round_up(n, _SUBLANE)
    if n8 >= 256:
        # Keep >= 2 grid steps for large inputs so both v7x TensorCores work.
        tile_n = min(tile_n, _round_up((n8 + 1) // 2, _SUBLANE))
    tile_n = min(tile_n, n8)
    n_pad = _round_up(n, tile_n)

    if n_pad != n:
        flat_idx = jnp.pad(flat_idx, (0, n_pad - n))  # pad ids -> row 0, sliced away

    grid = (n_pad // tile_n,)
    kernel = functools.partial(_embed_gather_kernel, unroll=tile_n <= 64)

    out = pl.pallas_call(
        kernel,
        out_shape=jax.ShapeDtypeStruct((n_pad, embed_dim), weight.dtype),
        grid_spec=pltpu.PrefetchScalarGridSpec(
            num_scalar_prefetch=1,                    # token ids -> SMEM
            grid=grid,
            in_specs=[
                # Full table, same block every step -> stays VMEM resident.
                pl.BlockSpec((num_emb, embed_dim), lambda i, idx: (0, 0)),
            ],
            out_specs=pl.BlockSpec((tile_n, embed_dim), lambda i, idx: (i, 0)),
        ),
        compiler_params=pltpu.CompilerParams(
            dimension_semantics=("parallel",),
            # v5e's default scoped VMEM is 16 MiB; raise toward physical.
            vmem_limit_bytes=int(vmem * 3 // 4),
        ),
    )(flat_idx, weight)

    if n_pad != n:
        out = out[:n]
    return out.reshape(*orig_shape, embed_dim)


if __name__ == "__main__":
    key = jax.random.PRNGKey(0)
    kw, kx = jax.random.split(key)

    # Module parameters (torch.rand -> uniform[0, 1) weights).
    num_embeddings = 32
    embedding_dim = 128
    weight = jax.random.uniform(
        kw, (num_embeddings, embedding_dim), dtype=jnp.float32)

    # Input indices kept in [0, num_embeddings // 2) so `x + x` stays in range,
    # mirroring the test harness which only feeds valid embedding indices.
    B, S = 2, 8
    x = jax.random.randint(kx, (B, S), 0, num_embeddings // 2, dtype=jnp.int32)

    out = jax.block_until_ready(embedding_from_add(x, weight))

    # Pure-JAX reference of the PyTorch forward; lookup must be bit-exact.
    ref = weight[(x + x).reshape(-1)].reshape(B, S, embedding_dim)
    assert out.shape == (B, S, embedding_dim), out.shape
    assert out.dtype == jnp.float32
    assert bool((out == ref).all()), "embedding rows are not bit-exact"

    print("KERNEL_OK")
</pallas_src>

<mosaic_0001>
module attributes {stable_mosaic.version = 11 : i64} {
  func.func @_embed_gather_kernel(%arg0: i32, %arg1: memref<16xi32, #tpu.memory_space<smem>>, %arg2: memref<32x128xf32, #tpu.memory_space<vmem>>, %arg3: memref<16x128xf32, #tpu.memory_space<vmem>>) attributes {dimension_semantics = [#tpu.dimension_semantics<parallel>], iteration_bounds = array<i64: 1>, scalar_prefetch = 1 : i64, scratch_operands = 0 : i64, tpu.core_type = #tpu.core_type<tc>, window_params = [{pipeline_mode = #tpu.pipeline_mode<synchronous>, transform_indices = @transform_0, window_bounds = array<i64: 32, 128>}, {transform_indices = @transform_1, window_bounds = array<i64: 16, 128>}]} {
    %c16_i32 = arith.constant 16 : i32
    %0 = arith.muli %arg0, %c16_i32 : i32
    %c0_i32 = arith.constant 0 : i32
    %1 = arith.addi %0, %c0_i32 : i32
    %2 = arith.index_cast %1 : i32 to index
    %3 = memref.load %arg1[%2] : memref<16xi32, #tpu.memory_space<smem>>
    %4 = arith.addi %3, %3 : i32
    %c0_i32_0 = arith.constant 0 : i32
    %c31_i32 = arith.constant 31 : i32
    %5 = arith.maxsi %c0_i32_0, %4 : i32
    %6 = arith.minsi %c31_i32, %5 : i32
    %7 = arith.index_cast %6 : i32 to index
    %c0 = arith.constant 0 : index
    %8 = vector.load %arg2[%7, %c0] : memref<32x128xf32, #tpu.memory_space<vmem>>, vector<1x128xf32>
    %9 = arith.index_cast %c0_i32 : i32 to index
    %c0_1 = arith.constant 0 : index
    %10 = vector.load %arg3[%9, %c0_1] : memref<16x128xf32, #tpu.memory_space<vmem>>, vector<1x128xf32>
    tpu.vector_store %arg3[%9, %c0_1], %8 {strides = array<i32>} : memref<16x128xf32, #tpu.memory_space<vmem>>, vector<1x128xf32>,
    %c1_i32 = arith.constant 1 : i32
    %11 = arith.addi %0, %c1_i32 : i32
    %12 = arith.index_cast %11 : i32 to index
    %13 = memref.load %arg1[%12] : memref<16xi32, #tpu.memory_space<smem>>
    %14 = arith.addi %13, %13 : i32
    %c0_i32_2 = arith.constant 0 : i32
    %c31_i32_3 = arith.constant 31 : i32
    %15 = arith.maxsi %c0_i32_2, %14 : i32
    %16 = arith.minsi %c31_i32_3, %15 : i32
    %17 = arith.index_cast %16 : i32 to index
    %c0_4 = arith.constant 0 : index
    %18 = vector.load %arg2[%17, %c0_4] : memref<32x128xf32, #tpu.memory_space<vmem>>, vector<1x128xf32>
    %19 = arith.index_cast %c1_i32 : i32 to index
    %c0_5 = arith.constant 0 : index
    %20 = vector.load %arg3[%19, %c0_5] : memref<16x128xf32, #tpu.memory_space<vmem>>, vector<1x128xf32>
    tpu.vector_store %arg3[%19, %c0_5], %18 {strides = array<i32>} : memref<16x128xf32, #tpu.memory_space<vmem>>, vector<1x128xf32>,
    %c2_i32 = arith.constant 2 : i32
    %21 = arith.addi %0, %c2_i32 : i32
    %22 = arith.index_cast %21 : i32 to index
    %23 = memref.load %arg1[%22] : memref<16xi32, #tpu.memory_space<smem>>
    %24 = arith.addi %23, %23 : i32
    %c0_i32_6 = arith.constant 0 : i32
    %c31_i32_7 = arith.constant 31 : i32
    %25 = arith.maxsi %c0_i32_6, %24 : i32
    %26 = arith.minsi %c31_i32_7, %25 : i32
    %27 = arith.index_cast %26 : i32 to index
    %c0_8 = arith.constant 0 : index
    %28 = vector.load %arg2[%27, %c0_8] : memref<32x128xf32, #tpu.memory_space<vmem>>, vector<1x128xf32>
    %29 = arith.index_cast %c2_i32 : i32 to index
    %c0_9 = arith.constant 0 : index
    %30 = vector.load %arg3[%29, %c0_9] : memref<16x128xf32, #tpu.memory_space<vmem>>, vector<1x128xf32>
    tpu.vector_store %arg3[%29, %c0_9], %28 {strides = array<i32>} : memref<16x128xf32, #tpu.memory_space<vmem>>, vector<1x128xf32>,
    %c3_i32 = arith.constant 3 : i32
    %31 = arith.addi %0, %c3_i32 : i32
    %32 = arith.index_cast %31 : i32 to index
    %33 = memref.load %arg1[%32] : memref<16xi32, #tpu.memory_space<smem>>
    %34 = arith.addi %33, %33 : i32
    %c0_i32_10 = arith.constant 0 : i32
    %c31_i32_11 = arith.constant 31 : i32
    %35 = arith.maxsi %c0_i32_10, %34 : i32
    %36 = arith.minsi %c31_i32_11, %35 : i32
    %37 = arith.index_cast %36 : i32 to index
    %c0_12 = arith.constant 0 : index
    %38 = vector.load %arg2[%37, %c0_12] : memref<32x128xf32, #tpu.memory_space<vmem>>, vector<1x128xf32>
    %39 = arith.index_cast %c3_i32 : i32 to index
    %c0_13 = arith.constant 0 : index
    %40 = vector.load %arg3[%39, %c0_13] : memref<16x128xf32, #tpu.memory_space<vmem>>, vector<1x128xf32>
    tpu.vector_store %arg3[%39, %c0_13], %38 {strides = array<i32>} : memref<16x128xf32, #tpu.memory_space<vmem>>, vector<1x128xf32>,
    %c4_i32 = arith.constant 4 : i32
    %41 = arith.addi %0, %c4_i32 : i32
    %42 = arith.index_cast %41 : i32 to index
    %43 = memref.load %arg1[%42] : memref<16xi32, #tpu.memory_space<smem>>
    %44 = arith.addi %43, %43 : i32
    %c0_i32_14 = arith.constant 0 : i32
    %c31_i32_15 = arith.constant 31 : i32
    %45 = arith.maxsi %c0_i32_14, %44 : i32
    %46 = arith.minsi %c31_i32_15, %45 : i32
    %47 = arith.index_cast %46 : i32 to index
    %c0_16 = arith.constant 0 : index
    %48 = vector.load %arg2[%47, %c0_16] : memref<32x128xf32, #tpu.memory_space<vmem>>, vector<1x128xf32>
    %49 = arith.index_cast %c4_i32 : i32 to index
    %c0_17 = arith.constant 0 : index
    %50 = vector.load %arg3[%49, %c0_17] : memref<16x128xf32, #tpu.memory_space<vmem>>, vector<1x128xf32>
    tpu.vector_store %arg3[%49, %c0_17], %48 {strides = array<i32>} : memref<16x128xf32, #tpu.memory_space<vmem>>, vector<1x128xf32>,
    %c5_i32 = arith.constant 5 : i32
    %51 = arith.addi %0, %c5_i32 : i32
    %52 = arith.index_cast %51 : i32 to index
    %53 = memref.load %arg1[%52] : memref<16xi32, #tpu.memory_space<smem>>
    %54 = arith.addi %53, %53 : i32
    %c0_i32_18 = arith.constant 0 : i32
    %c31_i32_19 = arith.constant 31 : i32
    %55 = arith.maxsi %c0_i32_18, %54 : i32
    %56 = arith.minsi %c31_i32_19, %55 : i32
    %57 = arith.index_cast %56 : i32 to index
    %c0_20 = arith.constant 0 : index
    %58 = vector.load %arg2[%57, %c0_20] : memref<32x128xf32, #tpu.memory_space<vmem>>, vector<1x128xf32>
    %59 = arith.index_cast %c5_i32 : i32 to index
    %c0_21 = arith.constant 0 : index
    %60 = vector.load %arg3[%59, %c0_21] : memref<16x128xf32, #tpu.memory_space<vmem>>, vector<1x128xf32>
    tpu.vector_store %arg3[%59, %c0_21], %58 {strides = array<i32>} : memref<16x128xf32, #tpu.memory_space<vmem>>, vector<1x128xf32>,
    %c6_i32 = arith.constant 6 : i32
    %61 = arith.addi %0, %c6_i32 : i32
    %62 = arith.index_cast %61 : i32 to index
    %63 = memref.load %arg1[%62] : memref<16xi32, #tpu.memory_space<smem>>
    %64 = arith.addi %63, %63 : i32
    %c0_i32_22 = arith.constant 0 : i32
    %c31_i32_23 = arith.constant 31 : i32
    %65 = arith.maxsi %c0_i32_22, %64 : i32
    %66 = arith.minsi %c31_i32_23, %65 : i32
    %67 = arith.index_cast %66 : i32 to index
    %c0_24 = arith.constant 0 : index
    %68 = vector.load %arg2[%67, %c0_24] : memref<32x128xf32, #tpu.memory_space<vmem>>, vector<1x128xf32>
    %69 = arith.index_cast %c6_i32 : i32 to index
    %c0_25 = arith.constant 0 : index
    %70 = vector.load %arg3[%69, %c0_25] : memref<16x128xf32, #tpu.memory_space<vmem>>, vector<1x128xf32>
    tpu.vector_store %arg3[%69, %c0_25], %68 {strides = array<i32>} : memref<16x128xf32, #tpu.memory_space<vmem>>, vector<1x128xf32>,
    %c7_i32 = arith.constant 7 : i32
    %71 = arith.addi %0, %c7_i32 : i32
    %72 = arith.index_cast %71 : i32 to index
    %73 = memref.load %arg1[%72] : memref<16xi32, #tpu.memory_space<smem>>
    %74 = arith.addi %73, %73 : i32
    %c0_i32_26 = arith.constant 0 : i32
    %c31_i32_27 = arith.constant 31 : i32
    %75 = arith.maxsi %c0_i32_26, %74 : i32
    %76 = arith.minsi %c31_i32_27, %75 : i32
    %77 = arith.index_cast %76 : i32 to index
    %c0_28 = arith.constant 0 : index
    %78 = vector.load %arg2[%77, %c0_28] : memref<32x128xf32, #tpu.memory_space<vmem>>, vector<1x128xf32>
    %79 = arith.index_cast %c7_i32 : i32 to index
    %c0_29 = arith.constant 0 : index
    %80 = vector.load %arg3[%79, %c0_29] : memref<16x128xf32, #tpu.memory_space<vmem>>, vector<1x128xf32>
    tpu.vector_store %arg3[%79, %c0_29], %78 {strides = array<i32>} : memref<16x128xf32, #tpu.memory_space<vmem>>, vector<1x128xf32>,
    %c8_i32 = arith.constant 8 : i32
    %81 = arith.addi %0, %c8_i32 : i32
    %82 = arith.index_cast %81 : i32 to index
    %83 = memref.load %arg1[%82] : memref<16xi32, #tpu.memory_space<smem>>
    %84 = arith.addi %83, %83 : i32
    %c0_i32_30 = arith.constant 0 : i32
    %c31_i32_31 = arith.constant 31 : i32
    %85 = arith.maxsi %c0_i32_30, %84 : i32
    %86 = arith.minsi %c31_i32_31, %85 : i32
    %87 = arith.index_cast %86 : i32 to index
    %c0_32 = arith.constant 0 : index
    %88 = vector.load %arg2[%87, %c0_32] : memref<32x128xf32, #tpu.memory_space<vmem>>, vector<1x128xf32>
    %89 = arith.index_cast %c8_i32 : i32 to index
    %c0_33 = arith.constant 0 : index
    %90 = vector.load %arg3[%89, %c0_33] : memref<16x128xf32, #tpu.memory_space<vmem>>, vector<1x128xf32>
    tpu.vector_store %arg3[%89, %c0_33], %88 {strides = array<i32>} : memref<16x128xf32, #tpu.memory_space<vmem>>, vector<1x128xf32>,
    %c9_i32 = arith.constant 9 : i32
    %91 = arith.addi %0, %c9_i32 : i32
    %92 = arith.index_cast %91 : i32 to index
    %93 = memref.load %arg1[%92] : memref<16xi32, #tpu.memory_space<smem>>
    %94 = arith.addi %93, %93 : i32
    %c0_i32_34 = arith.constant 0 : i32
    %c31_i32_35 = arith.constant 31 : i32
    %95 = arith.maxsi %c0_i32_34, %94 : i32
    %96 = arith.minsi %c31_i32_35, %95 : i32
    %97 = arith.index_cast %96 : i32 to index
    %c0_36 = arith.constant 0 : index
    %98 = vector.load %arg2[%97, %c0_36] : memref<32x128xf32, #tpu.memory_space<vmem>>, vector<1x128xf32>
    %99 = arith.index_cast %c9_i32 : i32 to index
    %c0_37 = arith.constant 0 : index
    %100 = vector.load %arg3[%99, %c0_37] : memref<16x128xf32, #tpu.memory_space<vmem>>, vector<1x128xf32>
    tpu.vector_store %arg3[%99, %c0_37], %98 {strides = array<i32>} : memref<16x128xf32, #tpu.memory_space<vmem>>, vector<1x128xf32>,
    %c10_i32 = arith.constant 10 : i32
    %101 = arith.addi %0, %c10_i32 : i32
    %102 = arith.index_cast %101 : i32 to index
    %103 = memref.load %arg1[%102] : memref<16xi32, #tpu.memory_space<smem>>
    %104 = arith.addi %103, %103 : i32
    %c0_i32_38 = arith.constant 0 : i32
    %c31_i32_39 = arith.constant 31 : i32
    %105 = arith.maxsi %c0_i32_38, %104 : i32
    %106 = arith.minsi %c31_i32_39, %105 : i32
    %107 = arith.index_cast %106 : i32 to index
    %c0_40 = arith.constant 0 : index
    %108 = vector.load %arg2[%107, %c0_40] : memref<32x128xf32, #tpu.memory_space<vmem>>, vector<1x128xf32>
    %109 = arith.index_cast %c10_i32 : i32 to index
    %c0_41 = arith.constant 0 : index
    %110 = vector.load %arg3[%109, %c0_41] : memref<16x128xf32, #tpu.memory_space<vmem>>, vector<1x128xf32>
    tpu.vector_store %arg3[%109, %c0_41], %108 {strides = array<i32>} : memref<16x128xf32, #tpu.memory_space<vmem>>, vector<1x128xf32>,
    %c11_i32 = arith.constant 11 : i32
    %111 = arith.addi %0, %c11_i32 : i32
    %112 = arith.index_cast %111 : i32 to index
    %113 = memref.load %arg1[%112] : memref<16xi32, #tpu.memory_space<smem>>
    %114 = arith.addi %113, %113 : i32
    %c0_i32_42 = arith.constant 0 : i32
    %c31_i32_43 = arith.constant 31 : i32
    %115 = arith.maxsi %c0_i32_42, %114 : i32
    %116 = arith.minsi %c31_i32_43, %115 : i32
    %117 = arith.index_cast %116 : i32 to index
    %c0_44 = arith.constant 0 : index
    %118 = vector.load %arg2[%117, %c0_44] : memref<32x128xf32, #tpu.memory_space<vmem>>, vector<1x128xf32>
    %119 = arith.index_cast %c11_i32 : i32 to index
    %c0_45 = arith.constant 0 : index
    %120 = vector.load %arg3[%119, %c0_45] : memref<16x128xf32, #tpu.memory_space<vmem>>, vector<1x128xf32>
    tpu.vector_store %arg3[%119, %c0_45], %118 {strides = array<i32>} : memref<16x128xf32, #tpu.memory_space<vmem>>, vector<1x128xf32>,
    %c12_i32 = arith.constant 12 : i32
    %121 = arith.addi %0, %c12_i32 : i32
    %122 = arith.index_cast %121 : i32 to index
    %123 = memref.load %arg1[%122] : memref<16xi32, #tpu.memory_space<smem>>
    %124 = arith.addi %123, %123 : i32
    %c0_i32_46 = arith.constant 0 : i32
    %c31_i32_47 = arith.constant 31 : i32
    %125 = arith.maxsi %c0_i32_46, %124 : i32
    %126 = arith.minsi %c31_i32_47, %125 : i32
    %127 = arith.index_cast %126 : i32 to index
    %c0_48 = arith.constant 0 : index
    %128 = vector.load %arg2[%127, %c0_48] : memref<32x128xf32, #tpu.memory_space<vmem>>, vector<1x128xf32>
    %129 = arith.index_cast %c12_i32 : i32 to index
    %c0_49 = arith.constant 0 : index
    %130 = vector.load %arg3[%129, %c0_49] : memref<16x128xf32, #tpu.memory_space<vmem>>, vector<1x128xf32>
    tpu.vector_store %arg3[%129, %c0_49], %128 {strides = array<i32>} : memref<16x128xf32, #tpu.memory_space<vmem>>, vector<1x128xf32>,
    %c13_i32 = arith.constant 13 : i32
    %131 = arith.addi %0, %c13_i32 : i32
    %132 = arith.index_cast %131 : i32 to index
    %133 = memref.load %arg1[%132] : memref<16xi32, #tpu.memory_space<smem>>
    %134 = arith.addi %133, %133 : i32
    %c0_i32_50 = arith.constant 0 : i32
    %c31_i32_51 = arith.constant 31 : i32
    %135 = arith.maxsi %c0_i32_50, %134 : i32
    %136 = arith.minsi %c31_i32_51, %135 : i32
    %137 = arith.index_cast %136 : i32 to index
    %c0_52 = arith.constant 0 : index
    %138 = vector.load %arg2[%137, %c0_52] : memref<32x128xf32, #tpu.memory_space<vmem>>, vector<1x128xf32>
    %139 = arith.index_cast %c13_i32 : i32 to index
    %c0_53 = arith.constant 0 : index
    %140 = vector.load %arg3[%139, %c0_53] : memref<16x128xf32, #tpu.memory_space<vmem>>, vector<1x128xf32>
    tpu.vector_store %arg3[%139, %c0_53], %138 {strides = array<i32>} : memref<16x128xf32, #tpu.memory_space<vmem>>, vector<1x128xf32>,
    %c14_i32 = arith.constant 14 : i32
    %141 = arith.addi %0, %c14_i32 : i32
    %142 = arith.index_cast %141 : i32 to index
    %143 = memref.load %arg1[%142] : memref<16xi32, #tpu.memory_space<smem>>
    %144 = arith.addi %143, %143 : i32
    %c0_i32_54 = arith.constant 0 : i32
    %c31_i32_55 = arith.constant 31 : i32
    %145 = arith.maxsi %c0_i32_54, %144 : i32
    %146 = arith.minsi %c31_i32_55, %145 : i32
    %147 = arith.index_cast %146 : i32 to index
    %c0_56 = arith.constant 0 : index
    %148 = vector.load %arg2[%147, %c0_56] : memref<32x128xf32, #tpu.memory_space<vmem>>, vector<1x128xf32>
    %149 = arith.index_cast %c14_i32 : i32 to index
    %c0_57 = arith.constant 0 : index
    %150 = vector.load %arg3[%149, %c0_57] : memref<16x128xf32, #tpu.memory_space<vmem>>, vector<1x128xf32>
    tpu.vector_store %arg3[%149, %c0_57], %148 {strides = array<i32>} : memref<16x128xf32, #tpu.memory_space<vmem>>, vector<1x128xf32>,
    %c15_i32 = arith.constant 15 : i32
    %151 = arith.addi %0, %c15_i32 : i32
    %152 = arith.index_cast %151 : i32 to index
    %153 = memref.load %arg1[%152] : memref<16xi32, #tpu.memory_space<smem>>
    %154 = arith.addi %153, %153 : i32
    %c0_i32_58 = arith.constant 0 : i32
    %c31_i32_59 = arith.constant 31 : i32
    %155 = arith.maxsi %c0_i32_58, %154 : i32
    %156 = arith.minsi %c31_i32_59, %155 : i32
    %157 = arith.index_cast %156 : i32 to index
    %c0_60 = arith.constant 0 : index
    %158 = vector.load %arg2[%157, %c0_60] : memref<32x128xf32, #tpu.memory_space<vmem>>, vector<1x128xf32>
    %159 = arith.index_cast %c15_i32 : i32 to index
    %c0_61 = arith.constant 0 : index
    %160 = vector.load %arg3[%159, %c0_61] : memref<16x128xf32, #tpu.memory_space<vmem>>, vector<1x128xf32>
    tpu.vector_store %arg3[%159, %c0_61], %158 {strides = array<i32>} : memref<16x128xf32, #tpu.memory_space<vmem>>, vector<1x128xf32>,
    %c16_i32_62 = arith.constant 16 : i32
    return
  }
  func.func @transform_0(%arg0: i32, %arg1: memref<16xi32, #tpu.memory_space<smem>>) -> (i32, i32) {
    %c0_i32 = arith.constant 0 : i32
    %c0_i32_0 = arith.constant 0 : i32
    %c0_i32_1 = arith.constant 0 : i32
    return %c0_i32, %c0_i32_0 : i32, i32
  }
  func.func @transform_1(%arg0: i32, %arg1: memref<16xi32, #tpu.memory_space<smem>>) -> (i32, i32) {
    %c0_i32 = arith.constant 0 : i32
    %c0_i32_0 = arith.constant 0 : i32
    return %arg0, %c0_i32 : i32, i32
  }
}

</mosaic_0001>

<bundles_post_ra>
// kernel: tpu_custom_call.1
= control target key start
LH: loop header
LB: loop body
LE: loop exit
PB: predicated region body
PF: predicated region fallthrough
CT: control target
= control target key end

     0   :  { %s507_s0 = inlined_call_operand.hbm [shape: s32[16], index: 0, kind: input, shape index: {}]   ;;  %s508_s1 = inlined_call_operand.hbm [shape: f32[32,128], index: 1, kind: input, shape index: {}]   ;;  %s509_s2 = inlined_call_operand.hbm [shape: f32[16,128], index: 2, kind: output, shape index: {}]  }
   0x1   :  { %s353_s11 = scalar_lea.hbm %s507_s0, 16 }
   0x2   :  { %p354_p0 = scmp.ne.s32.totalorder %s507_s0, %s353_s11  ;;  %p357_p1 = scmp.lt.u32.totalorder %s353_s11, %s507_s0 }
   0x4   :  { %p359_p2 = pnand %p357_p1, %p354_p0 }
   0x6   :  { %362 = shalt.err (!%p359_p2)  }
   0x7   :  { %s413_s16 = smov [#allocation3]  }
   0x8   :  { %8 = dma.hbm_to_smem %s507_s0, 16, %s413_s16, [#allocation2] }
   0x9   :  { %407 = dma.done.wait [#allocation2], 16 }
   0xa   :  { %408 = vsyncadd [#allocation2], 4294967280 }
   0xb   :  { %10 = sfence }
   0xc   :  { %11 = vsyncpa [#allocation5], 0 }
   0xd   :  { %12 = vsyncpa [#allocation6], 0  ;;  %s414_s19 = smov [#allocation4]   ;;  %s363_s23 = scalar_lea.hbm %s508_s1, 512 }
   0xe   :  { %s18_s20 = sshll.u32 %s414_s19, 4  ;;  %p364_p3 = scmp.ne.s32.totalorder %s508_s1, %s363_s23  ;;  %s19_s20 = int_to_ptr.vmem [resolvable:$true] %s18_s20 }
   0xf   :  { %p367_p4 = scmp.lt.u32.totalorder %s363_s23, %s508_s1 }
  0x11   :  { %p369_p5 = pnand %p367_p4, %p364_p3 }
  0x13   :  { %372 = shalt.err (!%p369_p5)
}
  0x14   :  { %s373_s0 = scalar_lea.vmem %s19_s20, 512  ;;  %p378_p7 = scmp.lt.s32.totalorder %s19_s20, %s19_s20 }
  0x15   :  { %p374_p6 = scmp.ne.s32.totalorder %s19_s20, %s373_s0  ;;  %p379_p8 = scmp.lt.s32.totalorder %s373_s0, %s373_s0 }
  0x17   :  { %p380_p9 = por %p379_p8, %p378_p7 }
  0x19   :  { %p381_p10 = pnand %p380_p9, %p374_p6 }
  0x1b   :  { %384 = shalt.err (!%p381_p10)
}
  0x1c   :  { %s415_s28 = smov 128   ;;  %s416_s29 = smov 8  }
  0x1d   :  { %24 = dma.hbm_to_vmem [thread:$0]  %s508_s1, 512, %s19_s20, [#allocation5], %s415_s28, %s415_s28, %s416_s29  }
  0x1e   :  { %409 = dma.done.wait [#allocation5], 512  }
  0x1f   :  { %410 = vsyncadd [#allocation5], 4294966784  ;;  %s29_s4 = sld [smem:[#allocation3]]  ;;  %s226_s5 = sld [smem:[#allocation3 + $0x1]] }
  0x20   :  { %s232_s6 = sld [smem:[#allocation3 + $0x2]]  ;;  %s238_s7 = sld [smem:[#allocation3 + $0x3]] }
  0x21   :  { %s460_s8 = sld [smem:[#allocation3 + $0x4]]  ;;  %s462_s9 = sld [smem:[#allocation3 + $0x5]] }
  0x22   :  { %s464_s10 = sld [smem:[#allocation3 + $0x6]]  ;;  %s466_s11 = sld [smem:[#allocation3 + $0x7]] }
  0x23   :  { %s468_s12 = sld [smem:[#allocation3 + $0x8]]  ;;  %s470_s13 = sld [smem:[#allocation3 + $0x9]] }
  0x24   :  { %s472_s14 = sld [smem:[#allocation3 + $0xa]]  ;;  %s474_s1 = sld [smem:[#allocation3 + $0xb]] }
  0x25   :  { %s30_s15 = sadd.s32 %s29_s4, %s29_s4  ;;  %s40_s16 = sadd.s32 %s226_s5, %s226_s5 }
  0x26   :  { %p31_p11 = scmp.gt.s32.totalorder %s30_s15, 0  ;;  %p221_p12 = scmp.lt.s32.totalorder %s30_s15, 31 }
  0x27   :  { %p41_p13 = scmp.gt.s32.totalorder %s40_s16, 0  ;;  %p227_p0 = scmp.lt.s32.totalorder %s40_s16, 31 }
  0x28   :  { %s511_s15 = smov (!%p31_p11, %s30_s15), 0  ;;  %s50_s17 = sadd.s32 %s232_s6, %s232_s6 }
  0x29   :  { %s513_s16 = smov (!%p41_p13, %s40_s16), 0  ;;  %s515_s15 = smov (!%p221_p12, %s511_s15), 31 }
  0x2a   :  { %s517_s16 = smov (!%p227_p0, %s513_s16), 31  ;;  %s35_s18 = scalar_lea.vmem [#allocation4], %s515_s15 }
  0x2b   :  { %v36_v0 = vld [vmem:[%s35_s18] sm:$0x1]  ;;  %p51_p1 = scmp.gt.s32.totalorder %s50_s17, 0  ;;  %s45_s19 = scalar_lea.vmem [#allocation4], %s517_s16 }
  0x2c   :  { %37 = vst [vmem:[#allocation7] sm:$0x1] %v36_v0  ;;  %v46_v1 = vld [vmem:[%s45_s19] sm:$0x1]  ;;  %p233_p2 = scmp.lt.s32.totalorder %s50_s17, 31  ;;  %s60_s20 = sadd.s32 %s238_s7, %s238_s7 }
  0x2d   :  { %47 = vst [vmem:[#allocation7 + $0x1] sm:$0x1] %v46_v1  ;;  %s519_s17 = smov (!%p51_p1, %s50_s17), 0  ;;  %p61_p3 = scmp.gt.s32.totalorder %s60_s20, 0 }
  0x2e   :  { %p239_p4 = scmp.lt.s32.totalorder %s60_s20, 31  ;;  %s521_s17 = smov (!%p233_p2, %s519_s17), 31 }
  0x2f   :  { %s523_s20 = smov (!%p61_p3, %s60_s20), 0  ;;  %s70_s21 = sadd.s32 %s460_s8, %s460_s8 }
  0x30   :  { %s55_s22 = scalar_lea.vmem [#allocation4], %s521_s17  ;;  %s525_s20 = smov (!%p239_p4, %s523_s20), 31 }
  0x31   :  { %v56_v2 = vld [vmem:[%s55_s22] sm:$0x1]  ;;  %p71_p5 = scmp.gt.s32.totalorder %s70_s21, 0  ;;  %p245_p6 = scmp.lt.s32.totalorder %s70_s21, 31 }
  0x32   :  { %57 = vst [vmem:[#allocation7 + $0x2] sm:$0x1] %v56_v2  ;;  %s80_s23 = sadd.s32 %s462_s9, %s462_s9  ;;  %s65_s24 = scalar_lea.vmem [#allocation4], %s525_s20 }
  0x33   :  { %v66_v3 = vld [vmem:[%s65_s24] sm:$0x1]  ;;  %s527_s21 = smov (!%p71_p5, %s70_s21), 0  ;;  %p81_p7 = scmp.gt.s32.totalorder %s80_s23, 0 }
  0x34   :  { %67 = vst [vmem:[#allocation7 + $0x3] sm:$0x1] %v66_v3  ;;  %p251_p8 = scmp.lt.s32.totalorder %s80_s23, 31  ;;  %s529_s21 = smov (!%p245_p6, %s527_s21), 31 }
  0x35   :  { %s531_s23 = smov (!%p81_p7, %s80_s23), 0  ;;  %s90_s25 = sadd.s32 %s464_s10, %s464_s10 }
  0x36   :  { %s75_s26 = scalar_lea.vmem [#allocation4], %s529_s21  ;;  %s533_s23 = smov (!%p251_p8, %s531_s23), 31 }
  0x37   :  { %v76_v4 = vld [vmem:[%s75_s26] sm:$0x1]  ;;  %p91_p9 = scmp.gt.s32.totalorder %s90_s25, 0  ;;  %p257_p10 = scmp.lt.s32.totalorder %s90_s25, 31 }
  0x38   :  { %77 = vst [vmem:[#allocation7 + $0x4] sm:$0x1] %v76_v4  ;;  %s100_s27 = sadd.s32 %s466_s11, %s466_s11  ;;  %s85_s0 = scalar_lea.vmem [#allocation4], %s533_s23 }
  0x39   :  { %v86_v5 = vld [vmem:[%s85_s0] sm:$0x1]  ;;  %s535_s25 = smov (!%p91_p9, %s90_s25), 0  ;;  %p101_p11 = scmp.gt.s32.totalorder %s100_s27, 0 }
  0x3a   :  { %87 = vst [vmem:[#allocation7 + $0x5] sm:$0x1] %v86_v5  ;;  %p263_p12 = scmp.lt.s32.totalorder %s100_s27, 31  ;;  %s537_s25 = smov (!%p257_p10, %s535_s25), 31 }
  0x3b   :  { %s539_s27 = smov (!%p101_p11, %s100_s27), 0  ;;  %s110_s30 = sadd.s32 %s468_s12, %s468_s12 }
  0x3c   :  { %s95_s3 = scalar_lea.vmem [#allocation4], %s537_s25  ;;  %s541_s27 = smov (!%p263_p12, %s539_s27), 31 }
  0x3d   :  { %v96_v6 = vld [vmem:[%s95_s3] sm:$0x1]  ;;  %p111_p13 = scmp.gt.s32.totalorder %s110_s30, 0  ;;  %p269_p0 = scmp.lt.s32.totalorder %s110_s30, 31 }
  0x3e   :  { %97 = vst [vmem:[#allocation7 + $0x6] sm:$0x1] %v96_v6  ;;  %s120_s4 = sadd.s32 %s470_s13, %s470_s13  ;;  %s105_s5 = scalar_lea.vmem [#allocation4], %s541_s27 }
  0x3f   :  { %v106_v7 = vld [vmem:[%s105_s5] sm:$0x1]  ;;  %s543_s30 = smov (!%p111_p13, %s110_s30), 0  ;;  %p121_p1 = scmp.gt.s32.totalorder %s120_s4, 0 }
  0x40   :  { %107 = vst [vmem:[#allocation7 + $0x7] sm:$0x1] %v106_v7  ;;  %p275_p2 = scmp.lt.s32.totalorder %s120_s4, 31  ;;  %s545_s30 = smov (!%p269_p0, %s543_s30), 31 }
  0x41   :  { %s547_s4 = smov (!%p121_p1, %s120_s4), 0  ;;  %s130_s6 = sadd.s32 %s472_s14, %s472_s14 }
  0x42   :  { %s115_s7 = scalar_lea.vmem [#allocation4], %s545_s30  ;;  %s549_s4 = smov (!%p275_p2, %s547_s4), 31 }
  0x43   :  { %v116_v8 = vld [vmem:[%s115_s7] sm:$0x1]  ;;  %p131_p3 = scmp.gt.s32.totalorder %s130_s6, 0  ;;  %p281_p4 = scmp.lt.s32.totalorder %s130_s6, 31 }
  0x44   :  { %117 = vst [vmem:[#allocation7 + $0x8] sm:$0x1] %v116_v8  ;;  %s140_s8 = sadd.s32 %s474_s1, %s474_s1  ;;  %s125_s9 = scalar_lea.vmem [#allocation4], %s549_s4 }
  0x45   :  { %v126_v9 = vld [vmem:[%s125_s9] sm:$0x1]  ;;  %s551_s6 = smov (!%p131_p3, %s130_s6), 0  ;;  %p141_p5 = scmp.gt.s32.totalorder %s140_s8, 0 }
  0x46   :  { %127 = vst [vmem:[#allocation7 + $0x9] sm:$0x1] %v126_v9  ;;  %p287_p6 = scmp.lt.s32.totalorder %s140_s8, 31  ;;  %s553_s6 = smov (!%p281_p4, %s551_s6), 31 }
  0x47   :  { %s555_s8 = smov (!%p141_p5, %s140_s8), 0  ;;  %s292_s10 = sld [smem:[#allocation3 + $0xc]] }
  0x48   :  { %s135_s11 = scalar_lea.vmem [#allocation4], %s553_s6  ;;  %s557_s8 = smov (!%p287_p6, %s555_s8), 31 }
  0x49   :  { %v136_v10 = vld [vmem:[%s135_s11] sm:$0x1]  ;;  %s298_s12 = sld [smem:[#allocation3 + $0xd]]  ;;  %s304_s13 = sld [smem:[#allocation3 + $0xe]] }
  0x4a   :  { %137 = vst [vmem:[#allocation7 + $0xa] sm:$0x1] %v136_v10  ;;  %s145_s14 = scalar_lea.vmem [#allocation4], %s557_s8  ;;  %s310_s1 = sld [smem:[#allocation3 + $0xf]] }
  0x4b   :  { %v146_v11 = vld [vmem:[%s145_s14] sm:$0x1]  ;;  %s417_s23 = smov [#allocation7]  }
  0x4c   :  { %147 = vst [vmem:[#allocation7 + $0xb] sm:$0x1] %v146_v11  ;;  %s193_s24 = sshll.u32 %s417_s23, 4  ;;  %s194_s24 = int_to_ptr.vmem [resolvable:$true] %s193_s24 }
  0x4d   :  { %s150_s15 = sadd.s32 %s292_s10, %s292_s10  ;;  %s385_s26 = scalar_lea.vmem %s194_s24, 256 }
  0x4e   :  { %p151_p7 = scmp.gt.s32.totalorder %s150_s15, 0  ;;  %p293_p8 = scmp.lt.s32.totalorder %s150_s15, 31 }
  0x4f   :  { %s160_s16 = sadd.s32 %s298_s12, %s298_s12  ;;  %s170_s17 = sadd.s32 %s304_s13, %s304_s13 }
  0x50   :  { %s559_s15 = smov (!%p151_p7, %s150_s15), 0  ;;  %p161_p9 = scmp.gt.s32.totalorder %s160_s16, 0 }
  0x51   :  { %p299_p10 = scmp.lt.s32.totalorder %s160_s16, 31  ;;  %s561_s15 = smov (!%p293_p8, %s559_s15), 31 }
  0x52   :  { %s563_s16 = smov (!%p161_p9, %s160_s16), 0  ;;  %p171_p11 = scmp.gt.s32.totalorder %s170_s17, 0 }
  0x53   :  { %s155_s18 = scalar_lea.vmem [#allocation4], %s561_s15  ;;  %s565_s16 = smov (!%p299_p10, %s563_s16), 31 }
  0x54   :  { %v156_v12 = vld [vmem:[%s155_s18] sm:$0x1]  ;;  %s172_s19 = scalar_select %p171_p11, %s170_s17, 0 }
  0x55   :  { %157 = vst [vmem:[#allocation7 + $0xc] sm:$0x1] %v156_v12  ;;  %p305_p12 = scmp.lt.s32.totalorder %s170_s17, 31  ;;  %s165_s20 = scalar_lea.vmem [#allocation4], %s565_s16 }
  0x56   :  { %v166_v13 = vld [vmem:[%s165_s20] sm:$0x1]  ;;  %s180_s21 = sadd.s32 %s310_s1, %s310_s1  ;;  %p386_p1 = scmp.ne.s32.totalorder %s194_s24, %s385_s26 }
  0x57   :  { %167 = vst [vmem:[#allocation7 + $0xd] sm:$0x1] %v166_v13  ;;  %s567_s19 = smov (!%p305_p12, %s172_s19), 31  ;;  %p181_p13 = scmp.gt.s32.totalorder %s180_s21, 0 }
  0x58   :  { %p311_p0 = scmp.lt.s32.totalorder %s180_s21, 31  ;;  %s175_s22 = scalar_lea.vmem [#allocation4], %s567_s19 }
  0x59   :  { %v176_v14 = vld [vmem:[%s175_s22] sm:$0x1]  ;;  %s569_s21 = smov (!%p181_p13, %s180_s21), 0  ;;  %p390_p2 = scmp.lt.s32.totalorder %s194_s24, %s194_s24 }
  0x5a   :  { %177 = vst [vmem:[#allocation7 + $0xe] sm:$0x1] %v176_v14  ;;  %s571_s21 = smov (!%p311_p0, %s569_s21), 31  ;;  %p391_p3 = scmp.lt.s32.totalorder %s385_s26, %s385_s26 }
  0x5b   :  { %s185_s25 = scalar_lea.vmem [#allocation4], %s571_s21 }
  0x5c   :  { %v186_v15 = vld [vmem:[%s185_s25] sm:$0x1]  ;;  %p392_p4 = por %p391_p3, %p390_p2 }
  0x5d   :  { %187 = vst [vmem:[#allocation7 + $0xf] sm:$0x1] %v186_v15 }
  0x5e   :  { %p393_p5 = pnand %p392_p4, %p386_p1 }
  0x60   :  { %396 = shalt.err (!%p393_p5)
}
  0x61   :  { %s397_s30 = scalar_lea.hbm %s509_s2, 256 }
  0x62   :  { %p398_p6 = scmp.ne.s32.totalorder %s509_s2, %s397_s30  ;;  %p401_p7 = scmp.lt.u32.totalorder %s397_s30, %s509_s2 }
  0x64   :  { %p403_p8 = pnand %p401_p7, %p398_p6 }
  0x66   :  { %406 = shalt.err (!%p403_p8)
}
  0x67   :  { %199 = dma.vmem_to_hbm [thread:$0]  %s194_s24, 256, %s509_s2, [#allocation6], %s415_s28, %s415_s28, %s416_s29  }
  0x68   :  { %411 = dma.done.wait [#allocation6], 256  }
  0x69   :  { %412 = vsyncadd [#allocation6], 4294967040 }
  0x6a   :  { %203 = vsyncpa [#allocation5], 1 }
  0x6b   :  { %204 = vsyncpa [#allocation6], 1 }

</bundles_post_ra>
